<compile_context>
chip_gen: v7x
topology: tpu7x:2x2x1
jax: 0.10.0
libtpu: 0.0.40
codegen_flags: <defaults>
</compile_context>

<pallas_src>
import jax
import jax.numpy as jnp
from jax.experimental import pallas as pl
from jax.experimental.pallas import tpu as pltpu

LANE = 128
SUBLANE = 8


def _round_up(n, m):
    return ((n + m - 1) // m) * m


def actor_kernel(conv_ref, x_ref, w1_ref, w2_ref, w3_ref, b3_ref, o_ref):
    """One batch tile of the ActorNet forward.

    conv_ref : SMEM (3,)            f32  = [conv_w0, conv_w1, conv_b]
    x_ref    : VMEM (2, Bt, N)      f32  (channel-0 / channel-1 rows)
    w1_ref   : VMEM (N,   H1p)      cdt  (zero-padded to 128 lanes)
    w2_ref   : VMEM (H1p, H2p)      cdt
    w3_ref   : VMEM (H2p, Op)       cdt
    b3_ref   : VMEM (1, Op)         f32
    o_ref    : VMEM (Bt, Op)        f32
    """
    cdt = w1_ref.dtype  # matmul-operand dtype (f32 or bf16); accumulation is f32
    cw0 = conv_ref[0]
    cw1 = conv_ref[1]
    cb = conv_ref[2]

    # Conv1d(2,1,1) over consecutive pairs + Flatten -> (Bt, N).  f32 on the VPU.
    h0 = x_ref[0] * cw0 + x_ref[1] * cw1 + cb

    # Linear(N, h1, bias=False) + ReLU   (MXU, f32 accumulate)
    h1 = jnp.dot(h0.astype(cdt), w1_ref[...], preferred_element_type=jnp.float32)
    h1 = jnp.maximum(h1, 0.0)

    # Linear(h1, h2, bias=False) + ReLU
    h2 = jnp.dot(h1.astype(cdt), w2_ref[...], preferred_element_type=jnp.float32)
    h2 = jnp.maximum(h2, 0.0)

    # Linear(h2, num_outputs) with bias (padded lanes carry zeros)
    o_ref[...] = (
        jnp.dot(h2.astype(cdt), w3_ref[...], preferred_element_type=jnp.float32)
        + b3_ref[...]
    )


def prepare_params(params, compute_dtype=jnp.float32):
    """One-time prep (hoisted out of the per-call path): transpose Linear
    weights to (in, out), cast to the MXU operand dtype, and zero-pad their
    output dims to the 128-lane width.  Conv1d's 3 scalars go into one SMEM
    vector; the final bias stays f32 (added after f32 accumulation)."""
    conv_w, conv_b, w1, w2, w3, b3 = (
        params["conv_w"], params["conv_b"], params["w1"],
        params["w2"], params["w3"], params["b3"],
    )
    h1, n = w1.shape          # PyTorch Linear weight layout: (out, in)
    h2 = w2.shape[0]
    no = w3.shape[0]
    h1p = _round_up(h1, LANE)
    h2p = _round_up(h2, LANE)
    op = _round_up(no, LANE)

    def pad_t(w, rows, cols):
        wt = w.T.astype(compute_dtype)                    # (in, out)
        out = jnp.zeros((rows, cols), compute_dtype)
        return out.at[: wt.shape[0], : wt.shape[1]].set(wt)

    return {
        "conv": jnp.stack(
            [conv_w[0, 0, 0], conv_w[0, 1, 0], conv_b[0]]
        ).astype(jnp.float32),
        "w1t": pad_t(w1, n, h1p),
        "w2t": pad_t(w2, h1p, h2p),
        "w3t": pad_t(w3, h2p, op),
        "b3": jnp.zeros((1, op), jnp.float32).at[0, :no].set(b3.astype(jnp.float32)),
        "num_inputs": int(n),
        "num_outputs": int(no),
    }


def actor_net_forward(x, prep, block_b=128):
    """Forward pass.

    x: either a single sample (any shape with 2*num_inputs elements, like the
       PyTorch module) -> returns (num_outputs,), or a batch (B, 2*num_inputs)
       -> returns (B, num_outputs) (one module forward per row).
    """
    n = prep["num_inputs"]
    no = prep["num_outputs"]
    op = prep["b3"].shape[1]

    x = jnp.asarray(x, jnp.float32)
    if x.ndim == 2 and x.shape[-1] == 2 * n:
        xb, single = x, False
    else:
        xb, single = x.reshape(1, 2 * n), True

    B = xb.shape[0]
    bt = _round_up(min(block_b, B), SUBLANE)      # batch tile (multiple of 8)
    Bp = _round_up(B, bt)

    # Glue: (B, 2N) -> pairs -> single merged channel-major input (2, Bp, N).
    xr = xb.reshape(B, n, 2)
    x01 = jnp.transpose(xr, (2, 0, 1))            # (2, B, N)
    if Bp != B:
        x01 = jnp.pad(x01, ((0, 0), (0, Bp - B), (0, 0)))

    grid = (Bp // bt,)
    w1t, w2t, w3t = prep["w1t"], prep["w2t"], prep["w3t"]

    out = pl.pallas_call(
        actor_kernel,
        out_shape=jax.ShapeDtypeStruct((Bp, op), jnp.float32),
        grid=grid,
        in_specs=[
            # Conv1d(2,1,1) scalars: whole (3,) array, resident in SMEM.
            pl.BlockSpec(memory_space=pltpu.MemorySpace.SMEM),
            # Merged channel input, tiled over the batch.
            pl.BlockSpec((2, bt, n), lambda i: (0, i, 0)),
            # Weights / bias: constant block index -> fetched once, resident.
            pl.BlockSpec(w1t.shape, lambda i: (0, 0)),
            pl.BlockSpec(w2t.shape, lambda i: (0, 0)),
            pl.BlockSpec(w3t.shape, lambda i: (0, 0)),
            pl.BlockSpec((1, op), lambda i: (0, 0)),
        ],
        out_specs=pl.BlockSpec((bt, op), lambda i: (i, 0)),
        compiler_params=pltpu.CompilerParams(
            dimension_semantics=("parallel",),    # v7x: split batch across TCs
        ),
    )(prep["conv"], x01, w1t, w2t, w3t, prep["b3"])

    out = out[:B, :no]                            # drop batch + lane padding
    return out[0] if single else out


def actor_net_reference(x, params):
    """Pure-JAX reference mirroring the PyTorch module exactly (one sample)."""
    conv_w, conv_b, w1, w2, w3, b3 = (
        params["conv_w"], params["conv_b"], params["w1"],
        params["w2"], params["w3"], params["b3"],
    )
    hi = jax.lax.Precision.HIGHEST
    xr = jnp.reshape(x, (-1, 2, 1))                                   # (N, 2, 1)
    # Conv1d(2,1,1): out[n,0,0] = sum_c w[0,c,0]*x[n,c,0] + b[0]
    h0 = jnp.einsum("ncl,ocl->no", xr, conv_w, precision=hi)[:, 0] + conv_b[0]
    h1 = jnp.maximum(jnp.dot(w1, h0, precision=hi), 0.0)
    h2 = jnp.maximum(jnp.dot(w2, h1, precision=hi), 0.0)
    return jnp.dot(w3, h2, precision=hi) + b3


def init_params(key, num_inputs, hidden1, hidden2, num_outputs):
    ks = jax.random.split(key, 6)
    return {
        "conv_w": 0.5 * jax.random.normal(ks[0], (1, 2, 1), jnp.float32),
        "conv_b": 0.1 * jax.random.normal(ks[1], (1,), jnp.float32),
        "w1": jax.random.normal(ks[2], (hidden1, num_inputs), jnp.float32)
        / jnp.sqrt(num_inputs),
        "w2": jax.random.normal(ks[3], (hidden2, hidden1), jnp.float32)
        / jnp.sqrt(hidden1),
        "w3": jax.random.normal(ks[4], (num_outputs, hidden2), jnp.float32)
        / jnp.sqrt(hidden2),
        "b3": 0.1 * jax.random.normal(ks[5], (num_outputs,), jnp.float32),
    }


if __name__ == "__main__":
    num_inputs, hidden1, hidden2, num_outputs = 32, 32, 32, 8

    key = jax.random.PRNGKey(0)
    k_x, k_xb, k_p = jax.random.split(key, 3)
    params = init_params(k_p, num_inputs, hidden1, hidden2, num_outputs)

    # ---------------- f32 path (numerically exact) ----------------
    prep32 = prepare_params(params, compute_dtype=jnp.float32)

    # Batched rollout-style inference: (B, 2*num_inputs)
    B = 256
    xb = jax.random.normal(k_xb, (B, 2 * num_inputs), jnp.float32)
    out_b = jax.block_until_ready(actor_net_forward(xb, prep32, block_b=128))
    ref_b = jax.vmap(lambda xi: actor_net_reference(xi, params))(xb)
    assert out_b.shape == (B, num_outputs)
    assert jnp.allclose(out_b, ref_b, atol=1e-4, rtol=1e-4), (out_b, ref_b)

    # Single sample, exactly the PyTorch forward signature.
    x1 = jax.random.normal(k_x, (2 * num_inputs,), jnp.float32)
    out_1 = jax.block_until_ready(actor_net_forward(x1, prep32))
    ref_1 = actor_net_reference(x1, params)
    assert out_1.shape == (num_outputs,)
    assert jnp.allclose(out_1, ref_1, atol=1e-4, rtol=1e-4), (out_1, ref_1)

    # ------- bf16 MXU-operand path (v6e/v7x), f32 accumulation -------
    prep_bf16 = prepare_params(params, compute_dtype=jnp.bfloat16)
    out_bf = jax.block_until_ready(actor_net_forward(xb, prep_bf16, block_b=128))
    assert out_bf.shape == (B, num_outputs)
    assert jnp.allclose(out_bf, ref_b, atol=5e-2, rtol=5e-2), (out_bf, ref_b)

    print("KERNEL_OK")
</pallas_src>

<mosaic_0001>
module attributes {stable_mosaic.version = 11 : i64} {
  func.func @actor_kernel(%arg0: i32, %arg1: memref<3xf32, #tpu.memory_space<smem>>, %arg2: memref<2x128x32xf32, #tpu.memory_space<vmem>>, %arg3: memref<32x128xf32, #tpu.memory_space<vmem>>, %arg4: memref<128x128xf32, #tpu.memory_space<vmem>>, %arg5: memref<128x128xf32, #tpu.memory_space<vmem>>, %arg6: memref<1x128xf32, #tpu.memory_space<vmem>>, %arg7: memref<128x128xf32, #tpu.memory_space<vmem>>) attributes {dimension_semantics = [#tpu.dimension_semantics<parallel>], iteration_bounds = array<i64: 2>, scalar_prefetch = 0 : i64, scratch_operands = 0 : i64, tpu.core_type = #tpu.core_type<tc>, window_params = [{transform_indices = @transform_0, window_bounds = array<i64: 3>}, {transform_indices = @transform_1, window_bounds = array<i64: 2, 128, 32>}, {pipeline_mode = #tpu.pipeline_mode<synchronous>, transform_indices = @transform_2, window_bounds = array<i64: 32, 128>}, {pipeline_mode = #tpu.pipeline_mode<synchronous>, transform_indices = @transform_3, window_bounds = array<i64: 128, 128>}, {pipeline_mode = #tpu.pipeline_mode<synchronous>, transform_indices = @transform_4, window_bounds = array<i64: 128, 128>}, {pipeline_mode = #tpu.pipeline_mode<synchronous>, transform_indices = @transform_5, window_bounds = array<i64: 1, 128>}, {transform_indices = @transform_6, window_bounds = array<i64: 128, 128>}]} {
    %c0 = arith.constant 0 : index
    %0 = memref.load %arg1[%c0] : memref<3xf32, #tpu.memory_space<smem>>
    %c1 = arith.constant 1 : index
    %1 = memref.load %arg1[%c1] : memref<3xf32, #tpu.memory_space<smem>>
    %c2 = arith.constant 2 : index
    %2 = memref.load %arg1[%c2] : memref<3xf32, #tpu.memory_space<smem>>
    %c0_0 = arith.constant 0 : index
    %c0_1 = arith.constant 0 : index
    %c0_2 = arith.constant 0 : index
    %3 = vector.load %arg2[%c0_0, %c0_1, %c0_2] : memref<2x128x32xf32, #tpu.memory_space<vmem>>, vector<1x128x32xf32>
    %4 = vector.shape_cast %3 : vector<1x128x32xf32> to vector<128x32xf32>
    %5 = vector.broadcast %0 : f32 to vector<128x32xf32>
    %6 = arith.mulf %4, %5 : vector<128x32xf32>
    %c1_3 = arith.constant 1 : index
    %c0_4 = arith.constant 0 : index
    %c0_5 = arith.constant 0 : index
    %7 = vector.load %arg2[%c1_3, %c0_4, %c0_5] : memref<2x128x32xf32, #tpu.memory_space<vmem>>, vector<1x128x32xf32>
    %8 = vector.shape_cast %7 : vector<1x128x32xf32> to vector<128x32xf32>
    %9 = vector.broadcast %1 : f32 to vector<128x32xf32>
    %10 = arith.mulf %8, %9 : vector<128x32xf32>
    %11 = arith.addf %6, %10 : vector<128x32xf32>
    %12 = vector.broadcast %2 : f32 to vector<128x32xf32>
    %13 = arith.addf %11, %12 : vector<128x32xf32>
    %c0_6 = arith.constant 0 : index
    %c0_7 = arith.constant 0 : index
    %14 = vector.load %arg3[%c0_6, %c0_7] : memref<32x128xf32, #tpu.memory_space<vmem>>, vector<32x128xf32>
    %cst = arith.constant dense<0.000000e+00> : vector<128x128xf32>
    %15 = tpu.matmul %13, %14, %cst {dimension_numbers = #tpu.dot_dimension_numbers<[1], [0], [0], [1], [0, 0, 1, 1], [], []>} : vector<128x32xf32>, vector<32x128xf32>, vector<128x128xf32> -> vector<128x128xf32>
    %cst_8 = arith.constant 0.000000e+00 : f32
    %16 = vector.broadcast %cst_8 : f32 to vector<128x128xf32>
    %17 = arith.maximumf %15, %16 : vector<128x128xf32>
    %c0_9 = arith.constant 0 : index
    %c0_10 = arith.constant 0 : index
    %18 = vector.load %arg4[%c0_9, %c0_10] : memref<128x128xf32, #tpu.memory_space<vmem>>, vector<128x128xf32>
    %cst_11 = arith.constant dense<0.000000e+00> : vector<128x128xf32>
    %19 = tpu.matmul %17, %18, %cst_11 {dimension_numbers = #tpu.dot_dimension_numbers<[1], [0], [0], [1], [0, 0, 1, 1], [], []>} : vector<128x128xf32>, vector<128x128xf32>, vector<128x128xf32> -> vector<128x128xf32>
    %cst_12 = arith.constant 0.000000e+00 : f32
    %20 = vector.broadcast %cst_12 : f32 to vector<128x128xf32>
    %21 = arith.maximumf %19, %20 : vector<128x128xf32>
    %c0_13 = arith.constant 0 : index
    %c0_14 = arith.constant 0 : index
    %22 = vector.load %arg5[%c0_13, %c0_14] : memref<128x128xf32, #tpu.memory_space<vmem>>, vector<128x128xf32>
    %cst_15 = arith.constant dense<0.000000e+00> : vector<128x128xf32>
    %23 = tpu.matmul %21, %22, %cst_15 {dimension_numbers = #tpu.dot_dimension_numbers<[1], [0], [0], [1], [0, 0, 1, 1], [], []>} : vector<128x128xf32>, vector<128x128xf32>, vector<128x128xf32> -> vector<128x128xf32>
    %c0_16 = arith.constant 0 : index
    %c0_17 = arith.constant 0 : index
    %24 = vector.load %arg6[%c0_16, %c0_17] : memref<1x128xf32, #tpu.memory_space<vmem>>, vector<1x128xf32>
    %25 = vector.broadcast %24 : vector<1x128xf32> to vector<128x128xf32>
    %26 = arith.addf %23, %25 : vector<128x128xf32>
    %c0_18 = arith.constant 0 : index
    %c0_19 = arith.constant 0 : index
    %27 = vector.load %arg7[%c0_18, %c0_19] : memref<128x128xf32, #tpu.memory_space<vmem>>, vector<128x128xf32>
    tpu.vector_store %arg7[%c0_18, %c0_19], %26 {strides = array<i32>} : memref<128x128xf32, #tpu.memory_space<vmem>>, vector<128x128xf32>,
    return
  }
  func.func @transform_0(%arg0: i32) -> i32 {
    %c0_i32 = arith.constant 0 : i32
    %c0_i32_0 = arith.constant 0 : i32
    return %c0_i32 : i32
  }
  func.func @transform_1(%arg0: i32) -> (i32, i32, i32) {
    %c0_i32 = arith.constant 0 : i32
    %c0_i32_0 = arith.constant 0 : i32
    %c0_i32_1 = arith.constant 0 : i32
    return %c0_i32, %arg0, %c0_i32_0 : i32, i32, i32
  }
  func.func @transform_2(%arg0: i32) -> (i32, i32) {
    %c0_i32 = arith.constant 0 : i32
    %c0_i32_0 = arith.constant 0 : i32
    %c0_i32_1 = arith.constant 0 : i32
    return %c0_i32, %c0_i32_0 : i32, i32
  }
  func.func @transform_3(%arg0: i32) -> (i32, i32) {
    %c0_i32 = arith.constant 0 : i32
    %c0_i32_0 = arith.constant 0 : i32
    %c0_i32_1 = arith.constant 0 : i32
    return %c0_i32, %c0_i32_0 : i32, i32
  }
  func.func @transform_4(%arg0: i32) -> (i32, i32) {
    %c0_i32 = arith.constant 0 : i32
    %c0_i32_0 = arith.constant 0 : i32
    %c0_i32_1 = arith.constant 0 : i32
    return %c0_i32, %c0_i32_0 : i32, i32
  }
  func.func @transform_5(%arg0: i32) -> (i32, i32) {
    %c0_i32 = arith.constant 0 : i32
    %c0_i32_0 = arith.constant 0 : i32
    %c0_i32_1 = arith.constant 0 : i32
    return %c0_i32, %c0_i32_0 : i32, i32
  }
  func.func @transform_6(%arg0: i32) -> (i32, i32) {
    %c0_i32 = arith.constant 0 : i32
    %c0_i32_0 = arith.constant 0 : i32
    return %arg0, %c0_i32 : i32, i32
  }
}

</mosaic_0001>

<bundles_post_ra>
// kernel: tpu_custom_call.1
= control target key start
LH: loop header
LB: loop body
LE: loop exit
PB: predicated region body
PF: predicated region fallthrough
CT: control target
= control target key end

     0   :  { %11 = vsyncpa [#allocation4], 0  ;;  %s2178_s0 = inlined_call_operand.vmem [shape: f32[3], index: 0, kind: input, shape index: {}]   ;;  %s2179_s1 = inlined_call_operand.vmem [shape: f32[2,256,32], index: 1, kind: input, shape index: {}]   ;;  %s2180_s2 = inlined_call_operand.vmem [shape: f32[32,128], index: 2, kind: input, shape index: {}]   ;;  %s2181_s3 = inlined_call_operand.vmem [shape: f32[128,128], index: 3, kind: input, shape index: {}]   ;;  %s2182_s4 = inlined_call_operand.vmem [shape: f32[128,128], index: 4, kind: input, shape index: {}]   ;;  %s2183_s5 = inlined_call_operand.vmem [shape: f32[1,128], index: 5, kind: input, shape index: {}]   ;;  %s2184_s6 = inlined_call_operand.hbm [shape: f32[256,128], index: 6, kind: output, shape index: {}]  }
   0x1   :  { %12 = vsyncpa [#allocation3], 0 }
   0x2   :  { %14 = vsyncpa [#allocation3 + $0x1], 0  ;;  %s1740_s21 = smov 0   ;;  %s1742_s22 = smov 0  }
   0x3   :  { %s1744_s23 = smov 0   ;;  %s1746_s24 = smov 0  }
   0x4 LB: > { %s1761_s25 = sadd.s32 4294967295, %s1699_s24   ;;  %s1197_s26 = sadd.s32 4294967294, %s1699_s24   ;;  %s1699_s24 = sphi %s1746_s24, %s2195_s24   ;;  %s1695_s23 = sphi %s1744_s23, %s2194_s23   ;;  %s1691_s22 = sphi %s1742_s22, %s2193_s22   ;;  %s1687_s21 = sphi %s1740_s21, %s2192_s21  }
   0x5   : > { %s1765_s27 = sadd.s32 1, %s1699_s24   ;;  %s48_s28 = sadd.s32 1, %s1695_s23 }
   0x6   : > { %s45_s29 = ssub.s32 %s1699_s24, %s1765_s27  ;;  %p55_p0 = scmp.ne.s32.totalorder %s1695_s23, %s1691_s22 }
   0x7   : > { %p46_p1 = scmp.eq.s32.totalorder %s45_s29, 0  ;;  %p56_p2 = scmp.eq.s32.totalorder %s1699_s24, 0 }
   0x8   : > { %p169_p3 = scmp.eq.s32.totalorder %s1761_s25, 1  ;;  %p174_p4 = scmp.ne.s32.totalorder %s1691_s22, %s1687_s21 }
   0x9   : > { %s1777_s30 = scalar_select %p46_p1, %s1695_s23, %s48_s28  }
   0xa   : > { %p1779_p5 = por %p56_p2, %p55_p0  ;;  %p1783_p6 = por %p169_p3, %p55_p0 }
   0xb   : > { %p175_p7 = scmp.eq.s32.totalorder %s1197_s26, 1  ;;  %p1198_p8 = scmp.ge.s32.totalorder %s1699_s24, 1 }
   0xc   : > { %s2187_s8 = scalar_select %p1783_p6, 1, 0 }
   0xd   : > { %p182_p9 = scmp.lt.s32.totalorder %s1699_s24, 3  ;;  %p1789_p10 = por %p175_p7, %p174_p4 }
   0xe   : > { %p1580_p11 = scmp.eq.s32.totalorder %s1761_s25, 0  ;;  %s195_s13 = sshll.u32 %s2178_s0, 4  ;;  %s196_s13 = int_to_ptr.vmem [resolvable:$true] %s195_s13 }
   0xf   : > { %s2188_s9 = scalar_select %p1789_p10, 1, 0 }
  0x10   : > { %p1794_p12 = pnand %p1198_p8, %p182_p9  ;;  %s1618_s14 = scalar_lea.vmem %s196_s13, 16 }
  0x11   : > { %p1619_p1 = scmp.ne.s32.totalorder %s196_s13, %s1618_s14  ;;  %p1626_p7 = scmp.lt.s32.totalorder %s196_s13, %s196_s13 }
  0x12   : > { %p1572_p13 = pneg %p1794_p12  ;;  %p1627_p8 = scmp.lt.s32.totalorder %s1618_s14, %s1618_s14 }
  0x14   : > { %p1573_p0 = pnand %p1580_p11, %p1572_p13  ;;  %p1628_p9 = por %p1627_p8, %p1626_p7 }
  0x16   : > { %p1620_p2 = pneg %p1573_p0 }
  0x18   : > { %p1621_p3 = pnand %p1620_p2, %p1619_p1 }
  0x1a   : > { %p1622_p4 = pneg %p1621_p3 }
  0x1c   : > { %p1629_p10 = pnand %p1628_p9, %p1622_p4 }
  0x1e   : > { %1632 = shalt.err (!%p1629_p10)
}
  0x1f   : > { %s1701_s15 = smov [#allocation2]   ;;  %p1200_p6 = scmp.ge.s32.totalorder %s1699_s24, 2 }
  0x20   : > { %1575 = dma.vmem_to_smem (!%p1573_p0), %s196_s13, 16, %s1701_s15, [#allocation4]  }
  0x21   : > { %214 = sbr.rel (%p1200_p6) target bundleno = 60 (0x3c), region = 36 }
  0x28   : > { %217 = sbr.rel (!%p1779_p5) target bundleno = 60 (0x3c), region = 40  ;;  %s219_s16 = sand.u32 (%p1779_p5), 1, %s1695_s23  }
  0x29   : > { %s1248_s17 = sshll.u32 (%p1779_p5), %s1699_s24, 7  ;;  %s1201_s18 = sshll.u32 (%p1779_p5), %s219_s16, 8 }
  0x2a   : > { %s1815_s26 = scalar_lea.vmem (%p1779_p5), %s2179_s1, %s1248_s17  ;;  %s1820_s28 = scalar_lea.vmem (%p1779_p5), [#allocation5], %s1201_s18 }
  0x2b   : > { %v314_v0 = vld [vmem:[%s1815_s26] sm:$0xff] (%p1779_p5)  ;;  %v316_v1 = vld [vmem:[%s1815_s26 + $0x8] sm:$0xff] (%p1779_p5)  ;;  %v318_v2 = vld [vmem:[%s1815_s26 + $0x10] sm:$0xff] (%p1779_p5) }
  0x2c   : > { %315 = vst [vmem:[%s1820_s28] sm:$0xff] (%p1779_p5), %v314_v0  ;;  %317 = vst [vmem:[%s1820_s28 + $0x8] sm:$0xff] (%p1779_p5), %v316_v1  ;;  %v320_v3 = vld [vmem:[%s1815_s26 + $0x18] sm:$0xff] (%p1779_p5)  ;;  %v322_v4 = vld [vmem:[%s1815_s26 + $0x20] sm:$0xff] (%p1779_p5) }
  0x2d   : > { %319 = vst [vmem:[%s1820_s28 + $0x10] sm:$0xff] (%p1779_p5), %v318_v2  ;;  %v324_v5 = vld [vmem:[%s1815_s26 + $0x28] sm:$0xff] (%p1779_p5)  ;;  %321 = vst [vmem:[%s1820_s28 + $0x18] sm:$0xff] (%p1779_p5), %v320_v3  ;;  %v326_v6 = vld [vmem:[%s1815_s26 + $0x30] sm:$0xff] (%p1779_p5) }
  0x2e   : > { %323 = vst [vmem:[%s1820_s28 + $0x20] sm:$0xff] (%p1779_p5), %v322_v4  ;;  %325 = vst [vmem:[%s1820_s28 + $0x28] sm:$0xff] (%p1779_p5), %v324_v5  ;;  %v328_v7 = vld [vmem:[%s1815_s26 + $0x38] sm:$0xff] (%p1779_p5)  ;;  %v330_v8 = vld [vmem:[%s1815_s26 + $0x40] sm:$0xff] (%p1779_p5) }
  0x2f   : > { %327 = vst [vmem:[%s1820_s28 + $0x30] sm:$0xff] %v326_v6  ;;  %329 = vst [vmem:[%s1820_s28 + $0x38] sm:$0xff] %v328_v7  ;;  %v332_v9 = vld [vmem:[%s1815_s26 + $0x48] sm:$0xff]  ;;  %v334_v10 = vld [vmem:[%s1815_s26 + $0x50] sm:$0xff] }
  0x30   : > { %331 = vst [vmem:[%s1820_s28 + $0x40] sm:$0xff] %v330_v8  ;;  %v336_v11 = vld [vmem:[%s1815_s26 + $0x58] sm:$0xff]  ;;  %333 = vst [vmem:[%s1820_s28 + $0x48] sm:$0xff] %v332_v9  ;;  %v338_v12 = vld [vmem:[%s1815_s26 + $0x60] sm:$0xff] }
  0x31   : > { %335 = vst [vmem:[%s1820_s28 + $0x50] sm:$0xff] %v334_v10  ;;  %337 = vst [vmem:[%s1820_s28 + $0x58] sm:$0xff] %v336_v11  ;;  %v340_v13 = vld [vmem:[%s1815_s26 + $0x68] sm:$0xff]  ;;  %v342_v14 = vld [vmem:[%s1815_s26 + $0x70] sm:$0xff] }
  0x32   : > { %339 = vst [vmem:[%s1820_s28 + $0x60] sm:$0xff] %v338_v12  ;;  %341 = vst [vmem:[%s1820_s28 + $0x68] sm:$0xff] %v340_v13  ;;  %v344_v15 = vld [vmem:[%s1815_s26 + $0x78] sm:$0xff]  ;;  %v346_v16 = vld [vmem:[%s1815_s26 + $0x100] sm:$0xff] }
  0x33   : > { %343 = vst [vmem:[%s1820_s28 + $0x70] sm:$0xff] %v342_v14  ;;  %v348_v17 = vld [vmem:[%s1815_s26 + $0x108] sm:$0xff]  ;;  %345 = vst [vmem:[%s1820_s28 + $0x78] sm:$0xff] %v344_v15  ;;  %v350_v18 = vld [vmem:[%s1815_s26 + $0x110] sm:$0xff] }
  0x34   : > { %347 = vst [vmem:[%s1820_s28 + $0x80] sm:$0xff] %v346_v16  ;;  %349 = vst [vmem:[%s1820_s28 + $0x88] sm:$0xff] %v348_v17  ;;  %v352_v19 = vld [vmem:[%s1815_s26 + $0x118] sm:$0xff]  ;;  %v354_v20 = vld [vmem:[%s1815_s26 + $0x120] sm:$0xff] }
  0x35   : > { %351 = vst [vmem:[%s1820_s28 + $0x90] sm:$0xff] %v350_v18  ;;  %353 = vst [vmem:[%s1820_s28 + $0x98] sm:$0xff] %v352_v19  ;;  %v356_v21 = vld [vmem:[%s1815_s26 + $0x128] sm:$0xff]  ;;  %v358_v22 = vld [vmem:[%s1815_s26 + $0x130] sm:$0xff] }
  0x36   : > { %355 = vst [vmem:[%s1820_s28 + $0xa0] sm:$0xff] %v354_v20  ;;  %v360_v23 = vld [vmem:[%s1815_s26 + $0x138] sm:$0xff]  ;;  %357 = vst [vmem:[%s1820_s28 + $0xa8] sm:$0xff] %v356_v21  ;;  %v362_v24 = vld [vmem:[%s1815_s26 + $0x140] sm:$0xff] }
  0x37   : > { %359 = vst [vmem:[%s1820_s28 + $0xb0] sm:$0xff] %v358_v22  ;;  %361 = vst [vmem:[%s1820_s28 + $0xb8] sm:$0xff] %v360_v23  ;;  %v364_v25 = vld [vmem:[%s1815_s26 + $0x148] sm:$0xff]  ;;  %v366_v26 = vld [vmem:[%s1815_s26 + $0x150] sm:$0xff] }
  0x38   : > { %363 = vst [vmem:[%s1820_s28 + $0xc0] sm:$0xff] %v362_v24  ;;  %365 = vst [vmem:[%s1820_s28 + $0xc8] sm:$0xff] %v364_v25  ;;  %v368_v27 = vld [vmem:[%s1815_s26 + $0x158] sm:$0xff]  ;;  %v370_v28 = vld [vmem:[%s1815_s26 + $0x160] sm:$0xff] }
  0x39   : > { %367 = vst [vmem:[%s1820_s28 + $0xd0] sm:$0xff] %v366_v26  ;;  %v372_v29 = vld [vmem:[%s1815_s26 + $0x168] sm:$0xff]  ;;  %369 = vst [vmem:[%s1820_s28 + $0xd8] sm:$0xff] %v368_v27  ;;  %v374_v30 = vld [vmem:[%s1815_s26 + $0x170] sm:$0xff] }
  0x3a   : > { %371 = vst [vmem:[%s1820_s28 + $0xe0] sm:$0xff] %v370_v28  ;;  %373 = vst [vmem:[%s1820_s28 + $0xe8] sm:$0xff] %v372_v29  ;;  %v376_v31 = vld [vmem:[%s1815_s26 + $0x178] sm:$0xff] }
  0x3b   : > { %375 = vst [vmem:[%s1820_s28 + $0xf0] sm:$0xff] %v374_v30  ;;  %377 = vst [vmem:[%s1820_s28 + $0xf8] sm:$0xff] %v376_v31 }
  0x3c PF: > { %386 = sbr.rel (%p1794_p12) target bundleno = 776 (0x308), region = 78 }
  0x43   : > { %1678 = dma.done.wait (%p1580_p11), [#allocation4], 16  }
  0x44   : > { %1680 = vsyncadd (%p1580_p11), [#allocation4], 4294967280  ;;  %s1890_s29 = sand.u32 1, %s1691_s22  }
  0x45   : > { %s1206_s7 = sshll.u32 %s1890_s29, 8 }
  0x46   : > { %s1893_s11 = scalar_lea.vmem [#allocation5], %s1206_s7 }
  0x47   : > { %399 = sfence }
  0x48   : > { %v528_v32 = vld [vmem:[%s2180_s2] sm:$0xff]  ;;  %v529_v33 = vld [vmem:[%s2180_s2 + $0x8] sm:$0xff]  ;;  %v530_v34 = vld [vmem:[%s2180_s2 + $0x10] sm:$0xff]  ;;  %s425_s17 = sld [smem:[#allocation2]]  ;;  %s1208_s20 = sld [smem:[#allocation2 + $0x1]]  ;;  %vm532_vm0 = vcmask 261120  }
  0x49   : > { %v1478_v35 = vpack.c.bf16 %v529_v33, %v528_v32  ;;  %v531_v36 = vld [vmem:[%s2180_s2 + $0x18] sm:$0xff]  ;;  %s1209_s26 = sld [smem:[#allocation2 + $0x2]]  ;;  %v428_v38 = vld [vmem:[%s1893_s11] sm:$0xff]  ;;  %v429_v40 = vld [vmem:[%s1893_s11 + $0x8] sm:$0xff]  ;;  %p2190_p10 = scmp.ne.s32.totalorder %s2187_s8, 0 }
  0x4a   : > { %v1482_v37 = vpack.c.bf16 %v531_v36, %v530_v34  ;;  %v1210_v39 = vld [vmem:[%s1893_s11 + $0x80] sm:$0xff]  ;;  %v1211_v41 = vld [vmem:[%s1893_s11 + $0x88] sm:$0xff]  ;;  %v430_v42 = vld [vmem:[%s1893_s11 + $0x10] sm:$0xff]  ;;  %s1702_s14 = smov [#allocation6]  }
  0x4b   : > { %1479 = vmatprep.subr.bf16.mxu0 %v1478_v35  ;;  %v1212_v43 = vld [vmem:[%s1893_s11 + $0x90] sm:$0xff]  ;;  %v431_v44 = vld [vmem:[%s1893_s11 + $0x18] sm:$0xff]  ;;  %v432_v47 = vld [vmem:[%s1893_s11 + $0x20] sm:$0xff]  ;;  %s1637_s15 = sshll.u32 %s1702_s14, 4  ;;  %s1638_s15 = int_to_ptr.vmem [resolvable:$false] %s1637_s15 }
  0x4c   : > { %1481 = vmatpush3.bf16.msra.mxu0 %v1478_v35  ;;  %v1213_v46 = vld [vmem:[%s1893_s11 + $0x98] sm:$0xff]  ;;  %v1214_v48 = vld [vmem:[%s1893_s11 + $0xa0] sm:$0xff]  ;;  %v433_v53 = vld [vmem:[%s1893_s11 + $0x28] sm:$0xff] }
  0x4d   : > { %1483 = vmatprep.subr.bf16.mxu0 %v1482_v37  ;;  %v1215_v58 = vld [vmem:[%s1893_s11 + $0xa8] sm:$0xff]  ;;  %v434_v59 = vld [vmem:[%s1893_s11 + $0x30] sm:$0xff]  ;;  %v435_v13 = vld [vmem:[%s1893_s11 + $0x38] sm:$0xff] }
  0x4e   : > { %v1914_v45 = vstv %s425_s17  ;;  %v1920_v50 = vstv %s1208_s20  ;;  %v1216_v0 = vld [vmem:[%s1893_s11 + $0xb0] sm:$0xff]  ;;  %v1217_v14 = vld [vmem:[%s1893_s11 + $0xb8] sm:$0xff]  ;;  %s1207_s17 = sshll.u32 %s1890_s29, 7 }
  0x4f   : > { %v445_v49 = vmul.f32 %v1914_v45, %v428_v38  ;;  %v1922_v51 = vstv %s1209_s26  ;;  %v446_v52 = vmul.f32 %v1914_v45, %v429_v40  ;;  %v479_v54 = vmul.f32 %v1210_v39, %v1920_v50  ;;  %v436_v15 = vld [vmem:[%s1893_s11 + $0x40] sm:$0xff]  ;;  %v437_v21 = vld [vmem:[%s1893_s11 + $0x48] sm:$0xff]  ;;  %v438_v27 = vld [vmem:[%s1893_s11 + $0x50] sm:$0xff]  ;;  %s2109_s20 = scalar_lea.vmem [#allocation6], %s1207_s17  ;;  %s1249_s26 = sshll.u32 %s1761_s25, 11 }
  0x50   : > { %1485 = vmatpush3.bf16.msra.mxu0 %v1482_v37  ;;  %v480_v55 = vmul.f32 %v1211_v41, %v1920_v50  ;;  %v447_v56 = vmul.f32 %v1914_v45, %v430_v42  ;;  %v481_v57 = vmul.f32 %v1212_v43, %v1920_v50  ;;  %v448_v60 = vmul.f32 %v1914_v45, %v431_v44  ;;  %v1218_v16 = vld [vmem:[%s1893_s11 + $0xc0] sm:$0xff]  ;;  %v1219_v22 = vld [vmem:[%s1893_s11 + $0xc8] sm:$0xff]  ;;  %v1220_v28 = vld [vmem:[%s1893_s11 + $0xd0] sm:$0xff]  ;;  %s1117_s28 = sshll.u32 %s2109_s20, 4  ;;  %s2130_s13 = scalar_lea.hbm %s2184_s6, %s1249_s26  ;;  %s2132_s28 = int_to_ptr.vmem [resolvable:$true] %s1117_s28 }
  0x51   : > { %v482_v61 = vmul.f32 %v1213_v46, %v1920_v50  ;;  %v449_v62 = vmul.f32 %v1914_v45, %v432_v47  ;;  %v483_v63 = vmul.f32 %v1214_v48, %v1920_v50  ;;  %v495_v1 = vadd.f32 %v479_v54, %v445_v49  ;;  %v742_v31 = vld [vmem:[%s2181_s3] sm:$0xff]  ;;  %v743_v34 = vld [vmem:[%s2181_s3 + $0x8] sm:$0xff]  ;;  %v744_v35 = vld [vmem:[%s2181_s3 + $0x10] sm:$0xff]  ;;  %s1104_s25 = scalar_lea.sflag [#allocation3], %s1890_s29  ;;  %s1633_s10 = scalar_lea.vmem %s2132_s28, 2048 }
  0x52   : > { %v496_v2 = vadd.f32 %v480_v55, %v446_v52  ;;  %v497_v3 = vadd.f32 %v481_v57, %v447_v56  ;;  %v450_v4 = vmul.f32 %v1914_v45, %v433_v53  ;;  %v484_v7 = vmul.f32 %v1215_v58, %v1920_v50  ;;  %v745_v36 = vld [vmem:[%s2181_s3 + $0x18] sm:$0xff]  ;;  %v440_v43 = vld [vmem:[%s1893_s11 + $0x60] sm:$0xff]  ;;  %v747_v56 = vld [vmem:[%s2181_s3 + $0x28] sm:$0xff]  ;;  %p1634_p5 = scmp.ne.s32.totalorder %s2132_s28, %s1633_s10  ;;  %p1640_p13 = scmp.lt.s32.totalorder %s2132_s28, %s1638_s15 }
  0x53   : > { %v498_v5 = vadd.f32 %v482_v61, %v448_v60  ;;  %v499_v6 = vadd.f32 %v483_v63, %v449_v62  ;;  %v451_v8 = vmul.f32 %v1914_v45, %v434_v59  ;;  %v512_v9 = vadd.f32 %v1922_v51, %v495_v1  ;;  %v439_v41 = vld [vmem:[%s1893_s11 + $0x58] sm:$0xff]  ;;  %v1222_v44 = vld [vmem:[%s1893_s11 + $0xe0] sm:$0xff]  ;;  %v441_v60 = vld [vmem:[%s1893_s11 + $0x68] sm:$0xff] }
  0x54   : > { %v513_v10 = vadd.f32 %v1922_v51, %v496_v2  ;;  %v514_v11 = vadd.f32 %v1922_v51, %v497_v3  ;;  %v485_v12 = vmul.f32 %v1216_v0, %v1920_v50  ;;  %v500_v18 = vadd.f32 %v484_v7, %v450_v4  ;;  %v1221_v42 = vld [vmem:[%s1893_s11 + $0xd8] sm:$0xff]  ;;  %v746_v55 = vld [vmem:[%s2181_s3 + $0x20] sm:$0xff]  ;;  %v1223_v61 = vld [vmem:[%s1893_s11 + $0xe8] sm:$0xff]  ;;  %p1635_p11 = pnand %p1634_p5, %p2190_p10 }
  0x55   : > { %1342 = vmatprep.mubr.msk.f32.mxu0 %vm532_vm0, %v512_v9  ;;  %v515_v17 = vadd.f32 %v1922_v51, %v498_v5  ;;  %v452_v19 = vmul.f32 %v1914_v45, %v435_v13  ;;  %v486_v20 = vmul.f32 %v1217_v14, %v1920_v50  ;;  %v516_v23 = vadd.f32 %v1922_v51, %v499_v6  ;;  %v442_v62 = vld [vmem:[%s1893_s11 + $0x70] sm:$0xff]  ;;  %v749_v6 = vld [vmem:[%s2181_s3 + $0x38] sm:$0xff] }
  0x56   : > { %1343 = vmatmul.mubr.msk.f32.vlgmr.msra.gmra.mrb[0].mxu0 %vm532_vm0, %v513_v10  ;;  %v501_v24 = vadd.f32 %v485_v12, %v451_v8  ;;  %v453_v25 = vmul.f32 %v1914_v45, %v436_v15  ;;  %v487_v26 = vmul.f32 %v1218_v16, %v1920_v50  ;;  %v454_v29 = vmul.f32 %v1914_v45, %v437_v21  ;;  %v1224_v63 = vld [vmem:[%s1893_s11 + $0xf0] sm:$0xff]  ;;  %v1225_v12 = vld [vmem:[%s1893_s11 + $0xf8] sm:$0xff]  ;;  %p1636_p12 = pneg %p1635_p11 }
  0x57   : > { %1345 = vmatprep.mubr.msk.f32.mxu0 %vm532_vm0, %v514_v11  ;;  %v488_v30 = vmul.f32 %v1219_v22, %v1920_v50  ;;  %v517_v32 = vadd.f32 %v1922_v51, %v500_v18  ;;  %v502_v33 = vadd.f32 %v486_v20, %v452_v19  ;;  %v455_v39 = vmul.f32 %v1914_v45, %v438_v27  ;;  %v748_v5 = vld [vmem:[%s2181_s3 + $0x30] sm:$0xff]  ;;  %v443_v11 = vld [vmem:[%s1893_s11 + $0x78] sm:$0xff]  ;;  %v750_v18 = vld [vmem:[%s2181_s3 + $0x40] sm:$0xff]  ;;  %s1639_s11 = scalar_lea.vmem %s1638_s15, 4096 }
  0x58   : > { %v518_v37 = vadd.f32 %v1922_v51, %v501_v24  ;;  %v503_v38 = vadd.f32 %v487_v26, %v453_v25  ;;  %v489_v40 = vmul.f32 %v1220_v28, %v1920_v50  ;;  %v1486_v47 = vpack.c.bf16 %v743_v34, %v742_v31  ;;  %v751_v19 = vld [vmem:[%s2181_s3 + $0x48] sm:$0xff]  ;;  %v753_v24 = vld [vmem:[%s2181_s3 + $0x58] sm:$0xff]  ;;  %v754_v28 = vld [vmem:[%s2181_s3 + $0x60] sm:$0xff]  ;;  %p1641_p0 = scmp.lt.s32.totalorder %s1639_s11, %s1633_s10 }
  0x59   : > { %v504_v46 = vadd.f32 %v488_v30, %v454_v29  ;;  %v1490_v48 = vpack.c.bf16 %v745_v36, %v744_v35  ;;  %v519_v49 = vadd.f32 %v1922_v51, %v502_v33  ;;  %v456_v52 = vmul.f32 %v1914_v45, %v439_v41  ;;  %v755_v29 = vld [vmem:[%s2181_s3 + $0x68] sm:$0xff]  ;;  %v757_v31 = vld [vmem:[%s2181_s3 + $0x78] sm:$0xff]  ;;  %v919_v33 = vld [vmem:[%s2182_s4] sm:$0xff] }
  0x5a   : > { %1346 = vmatmul.mubr.msk.f32.gmra.mrb[2].mxu0 %vm532_vm0, %v515_v17  ;;  %v490_v53 = vmul.f32 %v1221_v42, %v1920_v50  ;;  %v457_v54 = vmul.f32 %v1914_v45, %v440_v43  ;;  %v520_v57 = vadd.f32 %v1922_v51, %v503_v38  ;;  %v505_v58 = vadd.f32 %v489_v40, %v455_v39  ;;  %v920_v34 = vld [vmem:[%s2182_s4 + $0x8] sm:$0xff]  ;;  %v921_v35 = vld [vmem:[%s2182_s4 + $0x10] sm:$0xff]  ;;  %v923_v39 = vld [vmem:[%s2182_s4 + $0x20] sm:$0xff]  ;;  %p1642_p1 = por %p1641_p0, %p1640_p13 }
  0x5b   : > { %1348 = vmatprep.mubr.msk.f32.mxu0 %vm532_vm0, %v516_v23  ;;  %v491_v59 = vmul.f32 %v1222_v44, %v1920_v50  ;;  %1487 = vmatprep.subr.bf16.mxu1 %v1486_v47  ;;  %v1494_v0 = vpack.c.bf16 %v747_v56, %v746_v55  ;;  %v521_v1 = vadd.f32 %v1922_v51, %v504_v46  ;;  %v752_v23 = vld [vmem:[%s2181_s3 + $0x50] sm:$0xff]  ;;  %v924_v40 = vld [vmem:[%s2182_s4 + $0x28] sm:$0xff]  ;;  %v926_v43 = vld [vmem:[%s2182_s4 + $0x38] sm:$0xff] }
  0x5c   : > { %1489 = vmatpush3.bf16.msra.mxu1 %v1486_v47  ;;  %v506_v2 = vadd.f32 %v490_v53, %v456_v52  ;;  %v458_v3 = vmul.f32 %v1914_v45, %v441_v60  ;;  %v492_v4 = vmul.f32 %v1223_v61, %v1920_v50  ;;  %v522_v7 = vadd.f32 %v1922_v51, %v505_v58  ;;  %v925_v42 = vld [vmem:[%s2182_s4 + $0x30] sm:$0xff]  ;;  %v927_v46 = vld [vmem:[%s2182_s4 + $0x40] sm:$0xff]  ;;  %v928_v47 = vld [vmem:[%s2182_s4 + $0x48] sm:$0xff]  ;;  %p1643_p2 = pnand %p1642_p1, %p1636_p12 }
  0x5d   : > { %1491 = vmatprep.subr.bf16.mxu1 %v1490_v48  ;;  %v507_v8 = vadd.f32 %v491_v59, %v457_v54  ;;  %v459_v9 = vmul.f32 %v1914_v45, %v442_v62  ;;  %v493_v10 = vmul.f32 %v1224_v63, %v1920_v50  ;;  %v1498_v13 = vpack.c.bf16 %v749_v6, %v748_v5  ;;  %v930_v52 = vld [vmem:[%s2182_s4 + $0x58] sm:$0xff]  ;;  %v931_v54 = vld [vmem:[%s2182_s4 + $0x60] sm:$0xff]  ;;  %v932_v55 = vld [vmem:[%s2182_s4 + $0x68] sm:$0xff] }
  0x5e   : > { %1349 = vmatmul.mubr.msk.f32.gmra.mrb[4].mxu0 %vm532_vm0, %v517_v32  ;;  %v523_v14 = vadd.f32 %v1922_v51, %v506_v2  ;;  %v508_v15 = vadd.f32 %v492_v4, %v458_v3  ;;  %v460_v16 = vmul.f32 %v1914_v45, %v443_v11  ;;  %v494_v17 = vmul.f32 %v1225_v12, %v1920_v50 }
  0x5f   : > { %1351 = vmatprep.mubr.msk.f32.mxu0 %vm532_vm0, %v518_v37  ;;  %v524_v20 = vadd.f32 %v1922_v51, %v507_v8  ;;  %v509_v21 = vadd.f32 %v493_v10, %v459_v9  ;;  %v1502_v22 = vpack.c.bf16 %v751_v19, %v750_v18  ;;  %v1506_v26 = vpack.c.bf16 %v753_v24, %v752_v23  ;;  %v922_v37 = vld [vmem:[%s2182_s4 + $0x18] sm:$0xff]  ;;  %v933_v23 = vld [vmem:[%s2182_s4 + $0x70] sm:$0xff] }
  0x60   : > { %1493 = vmatpush3.bf16.msra.mxu1 %v1490_v48  ;;  %v525_v45 = vadd.f32 %v1922_v51, %v508_v15  ;;  %v510_v50 = vadd.f32 %v494_v17, %v460_v16  ;;  %v1510_v30 = vpack.c.bf16 %v755_v29, %v754_v28  ;;  %v1518_v36 = vpack.c.bf16 %v920_v34, %v919_v33  ;;  %v934_v24 = vld [vmem:[%s2182_s4 + $0x78] sm:$0xff] }
  0x61   : > { %1495 = vmatprep.subr.bf16.mxu1 %v1494_v0  ;;  %v526_v25 = vadd.f32 %v1922_v51, %v509_v21  ;;  %v1522_v38 = vpack.c.bf16 %v922_v37, %v921_v35  ;;  %v1526_v41 = vpack.c.bf16 %v924_v40, %v923_v39  ;;  %v1530_v44 = vpack.c.bf16 %v926_v43, %v925_v42 }
  0x62   : > { %1352 = vmatmul.mubr.msk.f32.gmra.mrb[6].mxu0 %vm532_vm0, %v519_v49  ;;  %v527_v27 = vadd.f32 %v1922_v51, %v510_v50  ;;  %v756_v51 = vld [vmem:[%s2181_s3 + $0x70] sm:$0xff]  ;;  %1519 = vmatprep.subr.bf16.mxu0 %v1518_v36  ;;  %v1534_v48 = vpack.c.bf16 %v928_v47, %v927_v46  ;;  %v1542_v56 = vpack.c.bf16 %v932_v55, %v931_v54 }
  0x63   : > { %1354 = vmatprep.mubr.msk.f32.mxu0 %vm532_vm0, %v520_v57  ;;  %v1514_v32 = vpack.c.bf16 %v757_v31, %v756_v51  ;;  %1521 = vmatpush3.bf16.msra.mxu0 %v1518_v36  ;;  %v929_v49 = vld [vmem:[%s2182_s4 + $0x50] sm:$0xff] }
  0x64   : > { %1497 = vmatpush3.bf16.msra.mxu1 %v1494_v0  ;;  %1523 = vmatprep.subr.bf16.mxu0 %v1522_v38  ;;  %v1538_v53 = vpack.c.bf16 %v930_v52, %v929_v49 }
  0x65   : > { %1499 = vmatprep.subr.bf16.mxu1 %v1498_v13 }
  0x66   : > { %1355 = vmatmul.mubr.msk.f32.gmra.mrb[8].mxu0 %vm532_vm0, %v521_v1 }
  0x67   : > { %1357 = vmatprep.mubr.msk.f32.mxu0 %vm532_vm0, %v522_v7  ;;  %1525 = vmatpush3.bf16.msra.mxu0 %v1522_v38 }
  0x68   : > { %1501 = vmatpush3.bf16.msra.mxu1 %v1498_v13  ;;  %1527 = vmatprep.subr.bf16.mxu0 %v1526_v41 }
  0x69   : > { %1503 = vmatprep.subr.bf16.mxu1 %v1502_v22 }
  0x6a   : > { %1358 = vmatmul.mubr.msk.f32.gmra.mrb[10].mxu0 %vm532_vm0, %v523_v14 }
  0x6b   : > { %1360 = vmatprep.mubr.msk.f32.mxu0 %vm532_vm0, %v524_v20  ;;  %1529 = vmatpush3.bf16.msra.mxu0 %v1526_v41 }
  0x6c   : > { %1505 = vmatpush3.bf16.msra.mxu1 %v1502_v22  ;;  %1531 = vmatprep.subr.bf16.mxu0 %v1530_v44 }
  0x6d   : > { %1507 = vmatprep.subr.bf16.mxu1 %v1506_v26 }
  0x6e   : > { %1361 = vmatmul.mubr.msk.f32.gmra.mrb[12].mxu0 %vm532_vm0, %v525_v45 }
  0x6f   : > { %1363 = vmatprep.mubr.msk.f32.mxu0 %vm532_vm0, %v526_v25  ;;  %1533 = vmatpush3.bf16.msra.mxu0 %v1530_v44  ;;  %v1546_v25 = vpack.c.bf16 %v934_v24, %v933_v23 }
  0x70   : > { %1509 = vmatpush3.bf16.msra.mxu1 %v1506_v26  ;;  %1535 = vmatprep.subr.bf16.mxu0 %v1534_v48 }
  0x71   : > { %1511 = vmatprep.subr.bf16.mxu1 %v1510_v30 }
  0x72   : > { %1364 = vmatmul.mubr.msk.f32.gmra.mrb[14].mxu0 %vm532_vm0, %v527_v27 }
  0x73   : > { %1537 = vmatpush3.bf16.msra.mxu0 %v1534_v48 }
  0x74   : > { %1513 = vmatpush3.bf16.msra.mxu1 %v1510_v30  ;;  %1539 = vmatprep.subr.bf16.mxu0 %v1538_v53 }
  0x75   : > { %1515 = vmatprep.subr.bf16.mxu1 %v1514_v32 }
  0x77   : > { %1541 = vmatpush3.bf16.msra.mxu0 %v1538_v53 }
  0x78   : > { %1517 = vmatpush3.bf16.msra.mxu1 %v1514_v32  ;;  %1543 = vmatprep.subr.bf16.mxu0 %v1542_v56 }
  0x79   : > { %1550 = vmatprep.subr.bf16.mxu1 %v1518_v36 }
  0x7b   : > { %1545 = vmatpush3.bf16.msra.mxu0 %v1542_v56 }
  0x7c   : > { %1547 = vmatprep.subr.bf16.mxu0 %v1546_v25 }
  0x7f   : > { %1549 = vmatpush3.bf16.msra.mxu0 %v1546_v25 }
 0x129   : > { %v1344_v57 = vpop.f32.mrb[0].mxu0 }
 0x12a   : > { %v647_v58 = vpop.f32.mrb[1].mxu0  ;;  %v727_v60 = vmax.f32 %v1344_v57, 0.0 }
 0x12b   : > { %v726_v59 = vmax.f32 %v647_v58, 0.0 }
 0x12d   : > { %v1347_v61 = vpop.f32.mrb[2].mxu0  ;;  %1398 = vmatprep.mubr.f32.mxu1 %v726_v59 }
 0x12e   : > { %v657_v62 = vpop.f32.mrb[3].mxu0  ;;  %1399 = vmatmul.mubr.f32.vlgmr.msra.gmra.mrb[0].mxu1 %v727_v60  ;;  %v729_v0 = vmax.f32 %v1347_v61, 0.0  ;;  %v1242_v60 = vld [vmem:[%s2183_s5] ss:$0 sm:$0xff] }
 0x12f   : > { %v728_v63 = vmax.f32 %v657_v62, 0.0  ;;  %1558 = vmatpush3.bf16.msra.mxu1 %v1518_v36 }
 0x130   : > { %1551 = vmatprep.subr.bf16.mxu1 %v1522_v38 }
 0x131   : > { %v1350_v1 = vpop.f32.mrb[4].mxu0  ;;  %1401 = vmatprep.mubr.f32.mxu1 %v728_v63 }
 0x132   : > { %v667_v2 = vpop.f32.mrb[5].mxu0  ;;  %1402 = vmatmul.mubr.f32.gmra.mrb[2].mxu1 %v729_v0  ;;  %v731_v4 = vmax.f32 %v1350_v1, 0.0 }
 0x133   : > { %v730_v3 = vmax.f32 %v667_v2, 0.0  ;;  %1559 = vmatpush3.bf16.msra.mxu1 %v1522_v38 }
 0x134   : > { %1552 = vmatprep.subr.bf16.mxu1 %v1526_v41 }
 0x135   : > { %v1353_v5 = vpop.f32.mrb[6].mxu0  ;;  %1404 = vmatprep.mubr.f32.mxu1 %v730_v3 }
 0x136   : > { %v677_v6 = vpop.f32.mrb[7].mxu0  ;;  %1405 = vmatmul.mubr.f32.gmra.mrb[4].mxu1 %v731_v4  ;;  %v733_v8 = vmax.f32 %v1353_v5, 0.0 }
 0x137   : > { %v732_v7 = vmax.f32 %v677_v6, 0.0  ;;  %1560 = vmatpush3.bf16.msra.mxu1 %v1526_v41 }
 0x138   : > { %1553 = vmatprep.subr.bf16.mxu1 %v1530_v44 }
 0x139   : > { %v1356_v9 = vpop.f32.mrb[8].mxu0  ;;  %1407 = vmatprep.mubr.f32.mxu1 %v732_v7 }
 0x13a   : > { %v687_v10 = vpop.f32.mrb[9].mxu0  ;;  %1408 = vmatmul.mubr.f32.gmra.mrb[6].mxu1 %v733_v8  ;;  %v735_v12 = vmax.f32 %v1356_v9, 0.0 }
 0x13b   : > { %v734_v11 = vmax.f32 %v687_v10, 0.0  ;;  %1561 = vmatpush3.bf16.msra.mxu1 %v1530_v44 }
 0x13c   : > { %1554 = vmatprep.subr.bf16.mxu1 %v1534_v48 }
 0x13d   : > { %v1359_v13 = vpop.f32.mrb[10].mxu0  ;;  %1410 = vmatprep.mubr.f32.mxu1 %v734_v11 }
 0x13e   : > { %v697_v14 = vpop.f32.mrb[11].mxu0  ;;  %1411 = vmatmul.mubr.f32.gmra.mrb[8].mxu1 %v735_v12  ;;  %v737_v16 = vmax.f32 %v1359_v13, 0.0 }
 0x13f   : > { %v736_v15 = vmax.f32 %v697_v14, 0.0  ;;  %1562 = vmatpush3.bf16.msra.mxu1 %v1534_v48 }
 0x140   : > { %1555 = vmatprep.subr.bf16.mxu1 %v1538_v53 }
 0x141   : > { %v1362_v17 = vpop.f32.mrb[12].mxu0  ;;  %1413 = vmatprep.mubr.f32.mxu1 %v736_v15 }
 0x142   : > { %v707_v18 = vpop.f32.mrb[13].mxu0  ;;  %1414 = vmatmul.mubr.f32.gmra.mrb[10].mxu1 %v737_v16  ;;  %v739_v20 = vmax.f32 %v1362_v17, 0.0 }
 0x143   : > { %v738_v19 = vmax.f32 %v707_v18, 0.0  ;;  %1563 = vmatpush3.bf16.msra.mxu1 %v1538_v53 }
 0x144   : > { %1556 = vmatprep.subr.bf16.mxu1 %v1542_v56 }
 0x145   : > { %v1365_v21 = vpop.f32.mrb[14].mxu0  ;;  %1416 = vmatprep.mubr.f32.mxu1 %v738_v19 }
 0x146   : > { %v717_v22 = vpop.f32.mrb[15].mxu0  ;;  %1417 = vmatmul.mubr.f32.gmra.mrb[12].mxu1 %v739_v20  ;;  %v741_v50 = vmax.f32 %v1365_v21, 0.0 }
 0x147   : > { %v740_v45 = vmax.f32 %v717_v22, 0.0  ;;  %1564 = vmatpush3.bf16.msra.mxu1 %v1542_v56 }
 0x148   : > { %1557 = vmatprep.subr.bf16.mxu1 %v1546_v25 }
 0x149   : > { %1419 = vmatprep.mubr.f32.mxu1 %v740_v45 }
 0x14a   : > { %1420 = vmatmul.mubr.f32.gmra.mrb[14].mxu1 %v741_v50 }
 0x14b   : > { %1565 = vmatpush3.bf16.msra.mxu1 %v1546_v25 }
 0x201   : > { %v1400_v26 = vpop.f32.mrb[0].mxu1 }
 0x202   : > { %v824_v27 = vpop.f32.mrb[1].mxu1  ;;  %v904_v29 = vmax.f32 %v1400_v26, 0.0 }
 0x203   : > { %v903_v28 = vmax.f32 %v824_v27, 0.0 }
 0x205   : > { %v1403_v30 = vpop.f32.mrb[2].mxu1  ;;  %1454 = vmatprep.mubr.f32.mxu0 %v903_v28 }
 0x206   : > { %v834_v51 = vpop.f32.mrb[3].mxu1  ;;  %1455 = vmatmul.mubr.f32.vlgmr.msra.gmra.mrb[16].mxu0 %v904_v29  ;;  %v906_v32 = vmax.f32 %v1403_v30, 0.0 }
 0x207   : > { %v905_v31 = vmax.f32 %v834_v51, 0.0 }
 0x209   : > { %v1406_v33 = vpop.f32.mrb[4].mxu1  ;;  %1457 = vmatprep.mubr.f32.mxu0 %v905_v31 }
 0x20a   : > { %v844_v34 = vpop.f32.mrb[5].mxu1  ;;  %1458 = vmatmul.mubr.f32.gmra.mrb[18].mxu0 %v906_v32  ;;  %v908_v36 = vmax.f32 %v1406_v33, 0.0 }
 0x20b   : > { %v907_v35 = vmax.f32 %v844_v34, 0.0 }
 0x20d   : > { %v1409_v37 = vpop.f32.mrb[6].mxu1  ;;  %1460 = vmatprep.mubr.f32.mxu0 %v907_v35 }
 0x20e   : > { %v854_v38 = vpop.f32.mrb[7].mxu1  ;;  %1461 = vmatmul.mubr.f32.gmra.mrb[20].mxu0 %v908_v36  ;;  %v910_v40 = vmax.f32 %v1409_v37, 0.0 }
 0x20f   : > { %v909_v39 = vmax.f32 %v854_v38, 0.0 }
 0x211   : > { %v1412_v41 = vpop.f32.mrb[8].mxu1  ;;  %1463 = vmatprep.mubr.f32.mxu0 %v909_v39 }
 0x212   : > { %v864_v42 = vpop.f32.mrb[9].mxu1  ;;  %1464 = vmatmul.mubr.f32.gmra.mrb[22].mxu0 %v910_v40  ;;  %v912_v44 = vmax.f32 %v1412_v41, 0.0 }
 0x213   : > { %v911_v43 = vmax.f32 %v864_v42, 0.0 }
 0x215   : > { %v1415_v46 = vpop.f32.mrb[10].mxu1  ;;  %1466 = vmatprep.mubr.f32.mxu0 %v911_v43 }
 0x216   : > { %v874_v47 = vpop.f32.mrb[11].mxu1  ;;  %1467 = vmatmul.mubr.f32.gmra.mrb[24].mxu0 %v912_v44  ;;  %v914_v49 = vmax.f32 %v1415_v46, 0.0 }
 0x217   : > { %v913_v48 = vmax.f32 %v874_v47, 0.0 }
 0x219   : > { %v1418_v52 = vpop.f32.mrb[12].mxu1  ;;  %1469 = vmatprep.mubr.f32.mxu0 %v913_v48 }
 0x21a   : > { %v884_v53 = vpop.f32.mrb[13].mxu1  ;;  %1470 = vmatmul.mubr.f32.gmra.mrb[26].mxu0 %v914_v49  ;;  %v916_v55 = vmax.f32 %v1418_v52, 0.0 }
 0x21b   : > { %v915_v54 = vmax.f32 %v884_v53, 0.0 }
 0x21d   : > { %v1421_v56 = vpop.f32.mrb[14].mxu1  ;;  %1472 = vmatprep.mubr.f32.mxu0 %v915_v54 }
 0x21e   : > { %v894_v57 = vpop.f32.mrb[15].mxu1  ;;  %1473 = vmatmul.mubr.f32.gmra.mrb[28].mxu0 %v916_v55  ;;  %v918_v59 = vmax.f32 %v1421_v56, 0.0 }
 0x21f   : > { %v917_v58 = vmax.f32 %v894_v57, 0.0 }
 0x221   : > { %1475 = vmatprep.mubr.f32.mxu1 %v917_v58 }
 0x222   : > { %1476 = vmatmul.mubr.f32.vlgmr.msra.gmra.mrb[16].mxu1 %v918_v59 }
 0x2d9   : > { %v1456_v61 = vpop.f32.mrb[16].mxu0 }
 0x2da   : > { %v1014_v62 = vadd.f32 %v1456_v61, %v1242_v60  ;;  %v1008_v63 = vpop.f32.mrb[17].mxu0 }
 0x2db   : > { %v1009_v0 = vadd.f32 %v1242_v60, %v1008_v63 }
 0x2dc   : > { %1088 = vst [vmem:[%s2109_s20 + $0x8] sm:$0xff] %v1014_v62 }
 0x2dd   : > { %1087 = vst [vmem:[%s2109_s20] sm:$0xff] %v1009_v0  ;;  %v1459_v1 = vpop.f32.mrb[18].mxu0 }
 0x2de   : > { %v1024_v2 = vadd.f32 %v1459_v1, %v1242_v60  ;;  %v1018_v3 = vpop.f32.mrb[19].mxu0 }
 0x2df   : > { %v1019_v4 = vadd.f32 %v1242_v60, %v1018_v3 }
 0x2e0   : > { %1090 = vst [vmem:[%s2109_s20 + $0x18] sm:$0xff] %v1024_v2 }
 0x2e1   : > { %1089 = vst [vmem:[%s2109_s20 + $0x10] sm:$0xff] %v1019_v4  ;;  %v1462_v5 = vpop.f32.mrb[20].mxu0 }
 0x2e2   : > { %v1034_v6 = vadd.f32 %v1462_v5, %v1242_v60  ;;  %v1028_v7 = vpop.f32.mrb[21].mxu0 }
 0x2e3   : > { %v1029_v8 = vadd.f32 %v1242_v60, %v1028_v7 }
 0x2e4   : > { %1092 = vst [vmem:[%s2109_s20 + $0x28] sm:$0xff] %v1034_v6 }
 0x2e5   : > { %1091 = vst [vmem:[%s2109_s20 + $0x20] sm:$0xff] %v1029_v8  ;;  %v1465_v9 = vpop.f32.mrb[22].mxu0 }
 0x2e6   : > { %v1044_v10 = vadd.f32 %v1465_v9, %v1242_v60  ;;  %v1038_v11 = vpop.f32.mrb[23].mxu0 }
 0x2e7   : > { %v1039_v12 = vadd.f32 %v1242_v60, %v1038_v11 }
 0x2e8   : > { %1094 = vst [vmem:[%s2109_s20 + $0x38] sm:$0xff] %v1044_v10 }
 0x2e9   : > { %1093 = vst [vmem:[%s2109_s20 + $0x30] sm:$0xff] %v1039_v12  ;;  %v1468_v13 = vpop.f32.mrb[24].mxu0 }
 0x2ea   : > { %v1054_v14 = vadd.f32 %v1468_v13, %v1242_v60  ;;  %v1048_v15 = vpop.f32.mrb[25].mxu0 }
 0x2eb   : > { %v1049_v16 = vadd.f32 %v1242_v60, %v1048_v15 }
 0x2ec   : > { %1096 = vst [vmem:[%s2109_s20 + $0x48] sm:$0xff] %v1054_v14 }
 0x2ed   : > { %1095 = vst [vmem:[%s2109_s20 + $0x40] sm:$0xff] %v1049_v16  ;;  %v1471_v17 = vpop.f32.mrb[26].mxu0 }
 0x2ee   : > { %v1064_v18 = vadd.f32 %v1471_v17, %v1242_v60  ;;  %v1058_v19 = vpop.f32.mrb[27].mxu0 }
 0x2ef   : > { %v1059_v20 = vadd.f32 %v1242_v60, %v1058_v19 }
 0x2f0   : > { %1098 = vst [vmem:[%s2109_s20 + $0x58] sm:$0xff] %v1064_v18 }
 0x2f1   : > { %1097 = vst [vmem:[%s2109_s20 + $0x50] sm:$0xff] %v1059_v20  ;;  %v1474_v21 = vpop.f32.mrb[28].mxu0 }
 0x2f2   : > { %v1074_v22 = vadd.f32 %v1474_v21, %v1242_v60  ;;  %v1068_v45 = vpop.f32.mrb[29].mxu0 }
 0x2f3   : > { %v1069_v50 = vadd.f32 %v1242_v60, %v1068_v45 }
 0x2f4   : > { %1100 = vst [vmem:[%s2109_s20 + $0x68] sm:$0xff] %v1074_v22 }
 0x2f5   : > { %1099 = vst [vmem:[%s2109_s20 + $0x60] sm:$0xff] %v1069_v50  ;;  %v1477_v23 = vpop.f32.mrb[16].mxu1 }
 0x2f6   : > { %v1084_v24 = vadd.f32 %v1477_v23, %v1242_v60  ;;  %v1078_v25 = vpop.f32.mrb[17].mxu1 }
 0x2f7   : > { %v1079_v26 = vadd.f32 %v1242_v60, %v1078_v25 }
 0x2f8   : > { %1102 = vst [vmem:[%s2109_s20 + $0x78] sm:$0xff] %v1084_v24 }
 0x2f9   : > { %1101 = vst [vmem:[%s2109_s20 + $0x70] sm:$0xff] %v1079_v26 }
 0x2fa   : > { %1646 = shalt.err (!%p1643_p2)
}
 0x2fb   : > { %s1647_s16 = scalar_lea.hbm %s2130_s13, 2048  ;;  %s1651_s19 = scalar_lea.hbm %s2184_s6, 4096 }
 0x2fc   : > { %p1648_p3 = scmp.ne.s32.totalorder %s2130_s13, %s1647_s16  ;;  %p1652_p8 = scmp.lt.u32.totalorder %s2130_s13, %s2184_s6 }
 0x2fd   : > { %p1653_p9 = scmp.lt.u32.totalorder %s1651_s19, %s1647_s16  ;;  %p1655_p11 = scmp.lt.u32.totalorder %s1647_s16, %s2130_s13 }
 0x2fe   : > { %p1649_p4 = pnand %p1648_p3, %p2190_p10 }
 0x2ff   : > { %p1654_p5 = por %p1653_p9, %p1652_p8 }
 0x300   : > { %p1650_p7 = pneg %p1649_p4 }
 0x301   : > { %p1656_p12 = por %p1655_p11, %p1654_p5 }
 0x303   : > { %p1657_p13 = pnand %p1656_p12, %p1650_p7 }
 0x305   : > { %1660 = shalt.err (!%p1657_p13)
}
 0x306   : > { %s1703_s7 = smov 128   ;;  %s1704_s12 = smov 8  }
 0x307   : > { %1570 = dma.vmem_to_hbm [thread:$0]  (%p2190_p10), %s2132_s28, 2048, %s2130_s13, %s1104_s25, %s1703_s7, %s1703_s7, %s1704_s12  }
 0x308 PF: > { %s1132_s10 = sand.u32 1, %s1687_s21   ;;  %p2191_p0 = scmp.ne.s32.totalorder %s2188_s9, 0 }
 0x309   : > { %s1133_s14 = scalar_lea.sflag [#allocation3], %s1132_s10 }
 0x30a   : > { %p1577_p1 = pnand %p1200_p6, %p2191_p0 }
 0x30c   : > { %1682 = dma.done.wait (!%p1577_p1), %s1133_s14, 2048  }
 0x30d   : > { %1684 = vsyncadd (!%p1577_p1), %s1133_s14, 4294965248  ;;  %p17_p2 = scmp.ge.s32.totalorder %s1765_s27, 4   ;;  %s2192_s21 = smov %s1691_s22 }
 0x30e   : > { %s2193_s22 = smov %s1695_s23  ;;  %s2194_s23 = smov %s1777_s30 }
 0x30f   : > { %s2195_s24 = smov %s1765_s27  ;;  %19 = sbr.rel (!%p17_p2) target bundleno = 4 (0x4), region = 128 }
 0x316   :  { %1138 = vsyncpa [#allocation3], 1 }
 0x317   :  { %1140 = vsyncpa [#allocation3 + $0x1], 1 }
 0x318   :  { %1141 = vsyncpa [#allocation4], 1 }
 0x319   :  { %1143 = vsyncpa [#allocation4 + $0x1], 1 }

</bundles_post_ra>
